<compile_context>
chip_gen: v5e
topology: v5e:2x2
jax: 0.10.0
libtpu: 0.0.40
codegen_flags: <defaults>
</compile_context>

<pallas_src>
import functools

import jax
import jax.numpy as jnp
from jax import lax
from jax.experimental import pallas as pl
from jax.experimental.pallas import tpu as pltpu

MARGIN = 0.0
BINS = 10
ALPHA = 0.75
LANES = 128
SUBLANES = 8


def _round_up(x, m):
    return ((x + m - 1) // m) * m


def _ghm_ranking_kernel(n_ref, o1_ref, o2_ref, t_ref, out_ref, *,
                        margin, bins, tile_rows, n_inner):
    """Accumulates per-lane partials into out_ref (shape (2*bins, 128)):

    rows 0..bins-1    : cumulative counts  c[e] = #{g >= e/bins},          e = 1..bins
    rows bins..2b-1   : cumulative losses  L[i] = sum(loss | g*bins >= i), i = 0..bins-1
    """
    p = pl.program_id(0)
    i = pl.program_id(1)
    step = p * n_inner + i                       # nominal (unclamped) row-block index

    @pl.when(i == 0)
    def _init():
        out_ref[...] = jnp.zeros_like(out_ref)

    o1 = o1_ref[...].astype(jnp.float32)
    o2 = o2_ref[...].astype(jnp.float32)
    t = t_ref[...].astype(jnp.float32)

    diff = o1 - o2
    loss = jnp.maximum(-t * diff + margin, 0.0)            # MarginRankingLoss, 'none'
    g = jax.nn.sigmoid(-diff * (2.0 * t - 1.0) + margin)   # lowers to EUP transcendental

    # Tail / phantom-block mask applied ONCE: invalid elements get g = 1.0 (they count
    # in every cumulative edge, so they cancel in the per-bin differences) and loss = 0.
    n_valid = n_ref[0]
    row_ids = lax.broadcasted_iota(jnp.int32, o1.shape, 0) + step * tile_rows
    lane_ids = lax.broadcasted_iota(jnp.int32, o1.shape, 1)
    valid = (row_ids * LANES + lane_ids) < n_valid
    g = jnp.where(valid, g, 1.0)
    loss = jnp.where(valid, loss, 0.0)

    gb = g * float(bins)
    inv_bins = 1.0 / float(bins)

    # Fused per-bin pass: one cumulative count edge and one cumulative loss threshold
    # per iteration; only sublane reductions in the hot loop; (1,128) partials are
    # accumulated directly into the resident output block (no gather, no concat).
    for idx in range(bins):
        edge = (idx + 1) * inv_bins
        cnt_row = jnp.sum((g >= edge).astype(jnp.float32), axis=0, keepdims=True)
        if idx == 0:
            loss_sel = loss                                 # g*bins >= 0 always holds
        else:
            loss_sel = jnp.where(gb >= float(idx), loss, 0.0)
        loss_row = jnp.sum(loss_sel, axis=0, keepdims=True)
        out_ref[pl.ds(idx, 1), :] += cnt_row
        out_ref[pl.ds(bins + idx, 1), :] += loss_row


def ghm_ranking_loss(output1, output2, target, *, margin=MARGIN, bins=BINS,
                     alpha=ALPHA, tile_rows=1024):
    """output1/output2/target: 1-D arrays of equal length N (any float dtype; feeding
    bf16 is fine — the cast to f32 happens inside the kernel).

    tile_rows: row-tile height; large tiles (>=512) amortize per-grid-step overhead —
    tiny tiles are a perf cliff and are only used in the tests below for coverage.
    """
    bins = int(bins)
    n = int(output1.shape[0])
    assert output2.shape == output1.shape and target.shape == output1.shape
    assert n >= 1

    # Pad only to the 8x128 vreg boundary (<= 1023 elements); never to a tile multiple —
    # partial / phantom tiles are handled by the in-kernel n_valid mask.
    n_pad = _round_up(n, SUBLANES * LANES)
    rows = n_pad // LANES

    def to_2d(x):
        x = x.reshape(-1)
        if n_pad != n:
            x = jnp.pad(x, (0, n_pad - n))
        return x.reshape(rows, LANES)

    o1, o2, tg = to_2d(output1), to_2d(output2), to_2d(target)

    tm = max(SUBLANES, _round_up(min(int(tile_rows), rows), SUBLANES))
    tm = min(tm, rows)
    n_blocks = pl.cdiv(rows, tm)
    num_cores = 2 if n_blocks >= 2 else 1       # v7x: use both TensorCores; harmless elsewhere
    n_inner = pl.cdiv(n_blocks, num_cores)

    def in_map(p, i, n_sm):
        # Clamp phantom trailing blocks onto the last real block; their contribution is
        # zeroed by the in-kernel n_valid mask (no out-of-bounds DMA).
        return (jnp.minimum(p * n_inner + i, n_blocks - 1), 0)

    kernel = functools.partial(
        _ghm_ranking_kernel, margin=float(margin), bins=bins,
        tile_rows=tm, n_inner=n_inner)

    acc = pl.pallas_call(
        kernel,
        out_shape=jax.ShapeDtypeStruct((num_cores, 2 * bins, LANES), jnp.float32),
        grid_spec=pltpu.PrefetchScalarGridSpec(
            num_scalar_prefetch=1,
            grid=(num_cores, n_inner),
            in_specs=[pl.BlockSpec((tm, LANES), in_map) for _ in range(3)],
            out_specs=pl.BlockSpec((None, 2 * bins, LANES),
                                   lambda p, i, n_sm: (p, 0, 0)),
        ),
        compiler_params=pltpu.CompilerParams(
            dimension_semantics=("parallel", "arbitrary")),
    )(jnp.array([n], dtype=jnp.int32), o1, o2, tg)

    # 20-scalar finalize in plain JAX: cross-lane/core reduce, adjacent differences,
    # pow(-alpha), combine, divide by N.
    per_bin = jnp.sum(acc, axis=(0, 2))                              # (2*bins,)
    total = float(num_cores * n_inner * tm * LANES)                  # c[0] = everything processed
    c = jnp.concatenate([jnp.array([total], jnp.float32), per_bin[:bins]])
    counts = c[:-1] - c[1:]                                          # edge-window histogram
    lc = per_bin[bins:]
    loss_sums = jnp.concatenate([lc[:-1] - lc[1:], lc[-1:]])         # keyed on floor(g*bins)
    w = jnp.maximum(counts, 1.0) ** (-float(alpha))                  # tot.clamp(min=1).pow(-alpha)
    return jnp.sum(w * loss_sums) / n


def _reference(o1, o2, t, margin=MARGIN, bins=BINS, alpha=ALPHA):
    """Pure-JAX reference mirroring the PyTorch forward."""
    o1 = o1.astype(jnp.float32)
    o2 = o2.astype(jnp.float32)
    t = t.astype(jnp.float32)
    diff = o1 - o2
    loss = jnp.maximum(-t * diff + margin, 0.0)
    g = jax.nn.sigmoid(-diff * (2.0 * t - 1.0) + margin)
    edges = jnp.arange(bins + 1, dtype=jnp.float32) / bins
    tot = jnp.stack(
        [jnp.sum(((g >= edges[i]) & (g < edges[i + 1])).astype(jnp.float32)) for i in range(bins)]
    )
    w = jnp.maximum(tot, 1.0) ** (-alpha)
    bin_idx = jnp.clip(jnp.floor(g * bins).astype(jnp.int32), 0, bins - 1)
    return jnp.mean(loss * w[bin_idx])


if __name__ == "__main__":
    key = jax.random.PRNGKey(0)
    k1, k2, k3, k4, k5, k6 = jax.random.split(key, 6)

    # Case 1: small, 128-aligned pairwise batch (single tile, single core chunk).
    N = 256
    o1 = jax.random.normal(k1, (N,), dtype=jnp.float32)
    o2 = jax.random.normal(k2, (N,), dtype=jnp.float32)
    tg = 2.0 * jax.random.bernoulli(k3, 0.5, (N,)).astype(jnp.float32) - 1.0
    res = ghm_ranking_loss(o1, o2, tg)
    jax.block_until_ready(res)
    ref = _reference(o1, o2, tg)
    assert jnp.allclose(res, ref, atol=1e-6, rtol=1e-4), (res, ref)

    # Case 2: non-128-multiple N with two row tiles -> exercises the 2-way (dual
    # TensorCore) parallel split, cross-tile accumulation and the padded-tail mask.
    N2 = 4000
    o1b = jax.random.normal(k4, (N2,), dtype=jnp.float32)
    o2b = jax.random.normal(k5, (N2,), dtype=jnp.float32)
    tgb = 2.0 * jax.random.bernoulli(k6, 0.5, (N2,)).astype(jnp.float32) - 1.0
    res2 = ghm_ranking_loss(o1b, o2b, tgb, tile_rows=16)
    jax.block_until_ready(res2)
    ref2 = _reference(o1b, o2b, tgb)
    assert jnp.allclose(res2, ref2, atol=1e-6, rtol=1e-4), (res2, ref2)

    # Case 3: odd block count -> one phantom trailing tile on the second core chunk
    # (index-map clamp + n_valid mask).  Tiny tile_rows here is only for coverage.
    N3 = 5000
    o1c = jax.random.normal(k1, (N3,), dtype=jnp.float32)
    o2c = jax.random.normal(k4, (N3,), dtype=jnp.float32)
    tgc = 2.0 * jax.random.bernoulli(k5, 0.5, (N3,)).astype(jnp.float32) - 1.0
    res3 = ghm_ranking_loss(o1c, o2c, tgc, tile_rows=8)
    jax.block_until_ready(res3)
    ref3 = _reference(o1c, o2c, tgc)
    assert jnp.allclose(res3, ref3, atol=1e-6, rtol=1e-4), (res3, ref3)

    # TODO(synk): sample_ids tracking / bin-statistics dicts (Python side effects in the
    # PyTorch module) have no Pallas equivalent and are omitted.
    print("KERNEL_OK")
</pallas_src>

<mosaic_0001>
module attributes {stable_mosaic.version = 11 : i64} {
  func.func @_ghm_ranking_kernel(%arg0: i32, %arg1: i32, %arg2: memref<1xi32, #tpu.memory_space<smem>>, %arg3: memref<8x128xf32, #tpu.memory_space<vmem>>, %arg4: memref<8x128xf32, #tpu.memory_space<vmem>>, %arg5: memref<8x128xf32, #tpu.memory_space<vmem>>, %arg6: memref<1x20x128xf32, #tpu.memory_space<vmem>>) attributes {dimension_semantics = [#tpu.dimension_semantics<parallel>, #tpu.dimension_semantics<arbitrary>], iteration_bounds = array<i64: 1, 1>, scalar_prefetch = 1 : i64, scratch_operands = 0 : i64, tpu.core_type = #tpu.core_type<tc>, window_params = [{transform_indices = @transform_0, window_bounds = array<i64: 8, 128>}, {transform_indices = @transform_1, window_bounds = array<i64: 8, 128>}, {transform_indices = @transform_2, window_bounds = array<i64: 8, 128>}, {transform_indices = @transform_3, window_bounds = array<i64: 1, 20, 128>}]} {
    %c1_i32 = arith.constant 1 : i32
    %0 = arith.muli %arg0, %c1_i32 : i32
    %1 = arith.addi %0, %arg1 : i32
    %c0_i32 = arith.constant 0 : i32
    %2 = arith.cmpi eq, %arg1, %c0_i32 : i32
    %3 = arith.extui %2 : i1 to i32
    %c0_i32_0 = arith.constant 0 : i32
    %4 = arith.cmpi ne, %3, %c0_i32_0 : i32
    scf.if %4 {
      %cst_166 = arith.constant 0.000000e+00 : f32
      %283 = vector.broadcast %cst_166 : f32 to vector<20x128xf32>
      %c0_167 = arith.constant 0 : index
      %c0_168 = arith.constant 0 : index
      %c0_169 = arith.constant 0 : index
      %284 = vector.load %arg6[%c0_167, %c0_168, %c0_169] : memref<1x20x128xf32, #tpu.memory_space<vmem>>, vector<1x20x128xf32>
      %285 = vector.shape_cast %284 : vector<1x20x128xf32> to vector<20x128xf32>
      %286 = vector.shape_cast %283 : vector<20x128xf32> to vector<1x20x128xf32>
      tpu.vector_store %arg6[%c0_167, %c0_168, %c0_169], %286 {strides = array<i32>} : memref<1x20x128xf32, #tpu.memory_space<vmem>>, vector<1x20x128xf32>,
    } else {
    }
    %c0 = arith.constant 0 : index
    %c0_1 = arith.constant 0 : index
    %5 = vector.load %arg3[%c0, %c0_1] : memref<8x128xf32, #tpu.memory_space<vmem>>, vector<8x128xf32>
    %c0_2 = arith.constant 0 : index
    %c0_3 = arith.constant 0 : index
    %6 = vector.load %arg4[%c0_2, %c0_3] : memref<8x128xf32, #tpu.memory_space<vmem>>, vector<8x128xf32>
    %c0_4 = arith.constant 0 : index
    %c0_5 = arith.constant 0 : index
    %7 = vector.load %arg5[%c0_4, %c0_5] : memref<8x128xf32, #tpu.memory_space<vmem>>, vector<8x128xf32>
    %8 = arith.subf %5, %6 : vector<8x128xf32>
    %cst = arith.constant 0.000000e+00 : f32
    %9 = vector.broadcast %cst : f32 to vector<8x128xf32>
    %10 = arith.subf %9, %7 : vector<8x128xf32>
    %11 = arith.mulf %10, %8 : vector<8x128xf32>
    %cst_6 = arith.constant 0.000000e+00 : f32
    %12 = vector.broadcast %cst_6 : f32 to vector<8x128xf32>
    %13 = arith.addf %11, %12 : vector<8x128xf32>
    %cst_7 = arith.constant 0.000000e+00 : f32
    %14 = vector.broadcast %cst_7 : f32 to vector<8x128xf32>
    %15 = arith.maximumf %13, %14 : vector<8x128xf32>
    %cst_8 = arith.constant 0.000000e+00 : f32
    %16 = vector.broadcast %cst_8 : f32 to vector<8x128xf32>
    %17 = arith.subf %16, %8 : vector<8x128xf32>
    %cst_9 = arith.constant 2.000000e+00 : f32
    %18 = vector.broadcast %cst_9 : f32 to vector<8x128xf32>
    %19 = arith.mulf %18, %7 : vector<8x128xf32>
    %cst_10 = arith.constant 1.000000e+00 : f32
    %20 = vector.broadcast %cst_10 : f32 to vector<8x128xf32>
    %21 = arith.subf %19, %20 : vector<8x128xf32>
    %22 = arith.mulf %17, %21 : vector<8x128xf32>
    %cst_11 = arith.constant 0.000000e+00 : f32
    %23 = vector.broadcast %cst_11 : f32 to vector<8x128xf32>
    %24 = arith.addf %22, %23 : vector<8x128xf32>
    %25 = arith.negf %24 : vector<8x128xf32>
    %26 = math.exp %25 : vector<8x128xf32>
    %cst_12 = arith.constant 1.000000e+00 : f32
    %27 = vector.broadcast %cst_12 : f32 to vector<8x128xf32>
    %28 = arith.addf %27, %26 : vector<8x128xf32>
    %29 = arith.divf %27, %28 : vector<8x128xf32>
    %c0_13 = arith.constant 0 : index
    %30 = memref.load %arg2[%c0_13] : memref<1xi32, #tpu.memory_space<smem>>
    %31 = tpu.iota {dimensions = array<i32: 0>} : vector<8x128xi32>
    %c8_i32 = arith.constant 8 : i32
    %32 = arith.muli %1, %c8_i32 : i32
    %33 = vector.broadcast %32 : i32 to vector<8x128xi32>
    %34 = arith.addi %31, %33 : vector<8x128xi32>
    %35 = tpu.iota {dimensions = array<i32: 1>} : vector<8x128xi32>
    %c128_i32 = arith.constant 128 : i32
    %36 = vector.broadcast %c128_i32 : i32 to vector<8x128xi32>
    %37 = arith.muli %34, %36 : vector<8x128xi32>
    %38 = arith.addi %37, %35 : vector<8x128xi32>
    %39 = vector.broadcast %30 : i32 to vector<8x128xi32>
    %40 = arith.cmpi slt, %38, %39 : vector<8x128xi32>
    %cst_14 = arith.constant 1.000000e+00 : f32
    %41 = vector.broadcast %cst_14 : f32 to vector<8x128xf32>
    %42 = arith.select %40, %29, %41 : vector<8x128xi1>, vector<8x128xf32>
    %cst_15 = arith.constant 0.000000e+00 : f32
    %43 = vector.broadcast %cst_15 : f32 to vector<8x128xf32>
    %44 = arith.select %40, %15, %43 : vector<8x128xi1>, vector<8x128xf32>
    %cst_16 = arith.constant 1.000000e+01 : f32
    %45 = vector.broadcast %cst_16 : f32 to vector<8x128xf32>
    %46 = arith.mulf %42, %45 : vector<8x128xf32>
    %cst_17 = arith.constant 1.000000e-01 : f32
    %47 = vector.broadcast %cst_17 : f32 to vector<8x128xf32>
    %48 = arith.cmpf oge, %42, %47 : vector<8x128xf32>
    %49 = arith.extui %48 : vector<8x128xi1> to vector<8x128xi32>
    %50 = arith.sitofp %49 : vector<8x128xi32> to vector<8x128xf32>
    %cst_18 = arith.constant dense<0.000000e+00> : vector<128xf32>
    %51 = vector.multi_reduction <add>, %50, %cst_18 [0] : vector<8x128xf32> to vector<128xf32>
    %52 = vector.shape_cast %51 : vector<128xf32> to vector<1x128xf32>
    %cst_19 = arith.constant dense<0.000000e+00> : vector<128xf32>
    %53 = vector.multi_reduction <add>, %44, %cst_19 [0] : vector<8x128xf32> to vector<128xf32>
    %54 = vector.shape_cast %53 : vector<128xf32> to vector<1x128xf32>
    %c0_20 = arith.constant 0 : index
    %c0_21 = arith.constant 0 : index
    %c0_22 = arith.constant 0 : index
    %55 = vector.load %arg6[%c0_20, %c0_21, %c0_22] : memref<1x20x128xf32, #tpu.memory_space<vmem>>, vector<1x1x128xf32>
    %56 = vector.shape_cast %55 : vector<1x1x128xf32> to vector<1x128xf32>
    %57 = arith.addf %56, %52 : vector<1x128xf32>
    %c0_23 = arith.constant 0 : index
    %c0_24 = arith.constant 0 : index
    %c0_25 = arith.constant 0 : index
    %58 = vector.load %arg6[%c0_23, %c0_24, %c0_25] : memref<1x20x128xf32, #tpu.memory_space<vmem>>, vector<1x1x128xf32>
    %59 = vector.shape_cast %58 : vector<1x1x128xf32> to vector<1x128xf32>
    %60 = vector.shape_cast %57 : vector<1x128xf32> to vector<1x1x128xf32>
    tpu.vector_store %arg6[%c0_23, %c0_24, %c0_25], %60 {strides = array<i32>} : memref<1x20x128xf32, #tpu.memory_space<vmem>>, vector<1x1x128xf32>,
    %c0_26 = arith.constant 0 : index
    %c10 = arith.constant 10 : index
    %c0_27 = arith.constant 0 : index
    %61 = vector.load %arg6[%c0_26, %c10, %c0_27] : memref<1x20x128xf32, #tpu.memory_space<vmem>>, vector<1x1x128xf32>
    %62 = vector.shape_cast %61 : vector<1x1x128xf32> to vector<1x128xf32>
    %63 = arith.addf %62, %54 : vector<1x128xf32>
    %c0_28 = arith.constant 0 : index
    %c10_29 = arith.constant 10 : index
    %c0_30 = arith.constant 0 : index
    %64 = vector.load %arg6[%c0_28, %c10_29, %c0_30] : memref<1x20x128xf32, #tpu.memory_space<vmem>>, vector<1x1x128xf32>
    %65 = vector.shape_cast %64 : vector<1x1x128xf32> to vector<1x128xf32>
    %66 = vector.shape_cast %63 : vector<1x128xf32> to vector<1x1x128xf32>
    tpu.vector_store %arg6[%c0_28, %c10_29, %c0_30], %66 {strides = array<i32>} : memref<1x20x128xf32, #tpu.memory_space<vmem>>, vector<1x1x128xf32>,
    %cst_31 = arith.constant 2.000000e-01 : f32
    %67 = vector.broadcast %cst_31 : f32 to vector<8x128xf32>
    %68 = arith.cmpf oge, %42, %67 : vector<8x128xf32>
    %69 = arith.extui %68 : vector<8x128xi1> to vector<8x128xi32>
    %70 = arith.sitofp %69 : vector<8x128xi32> to vector<8x128xf32>
    %cst_32 = arith.constant dense<0.000000e+00> : vector<128xf32>
    %71 = vector.multi_reduction <add>, %70, %cst_32 [0] : vector<8x128xf32> to vector<128xf32>
    %72 = vector.shape_cast %71 : vector<128xf32> to vector<1x128xf32>
    %cst_33 = arith.constant 1.000000e+00 : f32
    %73 = vector.broadcast %cst_33 : f32 to vector<8x128xf32>
    %74 = arith.cmpf oge, %46, %73 : vector<8x128xf32>
    %cst_34 = arith.constant 0.000000e+00 : f32
    %75 = vector.broadcast %cst_34 : f32 to vector<8x128xf32>
    %76 = arith.select %74, %44, %75 : vector<8x128xi1>, vector<8x128xf32>
    %cst_35 = arith.constant dense<0.000000e+00> : vector<128xf32>
    %77 = vector.multi_reduction <add>, %76, %cst_35 [0] : vector<8x128xf32> to vector<128xf32>
    %78 = vector.shape_cast %77 : vector<128xf32> to vector<1x128xf32>
    %c0_36 = arith.constant 0 : index
    %c1 = arith.constant 1 : index
    %c0_37 = arith.constant 0 : index
    %79 = vector.load %arg6[%c0_36, %c1, %c0_37] : memref<1x20x128xf32, #tpu.memory_space<vmem>>, vector<1x1x128xf32>
    %80 = vector.shape_cast %79 : vector<1x1x128xf32> to vector<1x128xf32>
    %81 = arith.addf %80, %72 : vector<1x128xf32>
    %c0_38 = arith.constant 0 : index
    %c1_39 = arith.constant 1 : index
    %c0_40 = arith.constant 0 : index
    %82 = vector.load %arg6[%c0_38, %c1_39, %c0_40] : memref<1x20x128xf32, #tpu.memory_space<vmem>>, vector<1x1x128xf32>
    %83 = vector.shape_cast %82 : vector<1x1x128xf32> to vector<1x128xf32>
    %84 = vector.shape_cast %81 : vector<1x128xf32> to vector<1x1x128xf32>
    tpu.vector_store %arg6[%c0_38, %c1_39, %c0_40], %84 {strides = array<i32>} : memref<1x20x128xf32, #tpu.memory_space<vmem>>, vector<1x1x128xf32>,
    %c0_41 = arith.constant 0 : index
    %c11 = arith.constant 11 : index
    %c0_42 = arith.constant 0 : index
    %85 = vector.load %arg6[%c0_41, %c11, %c0_42] : memref<1x20x128xf32, #tpu.memory_space<vmem>>, vector<1x1x128xf32>
    %86 = vector.shape_cast %85 : vector<1x1x128xf32> to vector<1x128xf32>
    %87 = arith.addf %86, %78 : vector<1x128xf32>
    %c0_43 = arith.constant 0 : index
    %c11_44 = arith.constant 11 : index
    %c0_45 = arith.constant 0 : index
    %88 = vector.load %arg6[%c0_43, %c11_44, %c0_45] : memref<1x20x128xf32, #tpu.memory_space<vmem>>, vector<1x1x128xf32>
    %89 = vector.shape_cast %88 : vector<1x1x128xf32> to vector<1x128xf32>
    %90 = vector.shape_cast %87 : vector<1x128xf32> to vector<1x1x128xf32>
    tpu.vector_store %arg6[%c0_43, %c11_44, %c0_45], %90 {strides = array<i32>} : memref<1x20x128xf32, #tpu.memory_space<vmem>>, vector<1x1x128xf32>,
    %cst_46 = arith.constant 3.000000e-01 : f32
    %91 = vector.broadcast %cst_46 : f32 to vector<8x128xf32>
    %92 = arith.cmpf oge, %42, %91 : vector<8x128xf32>
    %93 = arith.extui %92 : vector<8x128xi1> to vector<8x128xi32>
    %94 = arith.sitofp %93 : vector<8x128xi32> to vector<8x128xf32>
    %cst_47 = arith.constant dense<0.000000e+00> : vector<128xf32>
    %95 = vector.multi_reduction <add>, %94, %cst_47 [0] : vector<8x128xf32> to vector<128xf32>
    %96 = vector.shape_cast %95 : vector<128xf32> to vector<1x128xf32>
    %cst_48 = arith.constant 2.000000e+00 : f32
    %97 = vector.broadcast %cst_48 : f32 to vector<8x128xf32>
    %98 = arith.cmpf oge, %46, %97 : vector<8x128xf32>
    %cst_49 = arith.constant 0.000000e+00 : f32
    %99 = vector.broadcast %cst_49 : f32 to vector<8x128xf32>
    %100 = arith.select %98, %44, %99 : vector<8x128xi1>, vector<8x128xf32>
    %cst_50 = arith.constant dense<0.000000e+00> : vector<128xf32>
    %101 = vector.multi_reduction <add>, %100, %cst_50 [0] : vector<8x128xf32> to vector<128xf32>
    %102 = vector.shape_cast %101 : vector<128xf32> to vector<1x128xf32>
    %c0_51 = arith.constant 0 : index
    %c2 = arith.constant 2 : index
    %c0_52 = arith.constant 0 : index
    %103 = vector.load %arg6[%c0_51, %c2, %c0_52] : memref<1x20x128xf32, #tpu.memory_space<vmem>>, vector<1x1x128xf32>
    %104 = vector.shape_cast %103 : vector<1x1x128xf32> to vector<1x128xf32>
    %105 = arith.addf %104, %96 : vector<1x128xf32>
    %c0_53 = arith.constant 0 : index
    %c2_54 = arith.constant 2 : index
    %c0_55 = arith.constant 0 : index
    %106 = vector.load %arg6[%c0_53, %c2_54, %c0_55] : memref<1x20x128xf32, #tpu.memory_space<vmem>>, vector<1x1x128xf32>
    %107 = vector.shape_cast %106 : vector<1x1x128xf32> to vector<1x128xf32>
    %108 = vector.shape_cast %105 : vector<1x128xf32> to vector<1x1x128xf32>
    tpu.vector_store %arg6[%c0_53, %c2_54, %c0_55], %108 {strides = array<i32>} : memref<1x20x128xf32, #tpu.memory_space<vmem>>, vector<1x1x128xf32>,
    %c0_56 = arith.constant 0 : index
    %c12 = arith.constant 12 : index
    %c0_57 = arith.constant 0 : index
    %109 = vector.load %arg6[%c0_56, %c12, %c0_57] : memref<1x20x128xf32, #tpu.memory_space<vmem>>, vector<1x1x128xf32>
    %110 = vector.shape_cast %109 : vector<1x1x128xf32> to vector<1x128xf32>
    %111 = arith.addf %110, %102 : vector<1x128xf32>
    %c0_58 = arith.constant 0 : index
    %c12_59 = arith.constant 12 : index
    %c0_60 = arith.constant 0 : index
    %112 = vector.load %arg6[%c0_58, %c12_59, %c0_60] : memref<1x20x128xf32, #tpu.memory_space<vmem>>, vector<1x1x128xf32>
    %113 = vector.shape_cast %112 : vector<1x1x128xf32> to vector<1x128xf32>
    %114 = vector.shape_cast %111 : vector<1x128xf32> to vector<1x1x128xf32>
    tpu.vector_store %arg6[%c0_58, %c12_59, %c0_60], %114 {strides = array<i32>} : memref<1x20x128xf32, #tpu.memory_space<vmem>>, vector<1x1x128xf32>,
    %cst_61 = arith.constant 4.000000e-01 : f32
    %115 = vector.broadcast %cst_61 : f32 to vector<8x128xf32>
    %116 = arith.cmpf oge, %42, %115 : vector<8x128xf32>
    %117 = arith.extui %116 : vector<8x128xi1> to vector<8x128xi32>
    %118 = arith.sitofp %117 : vector<8x128xi32> to vector<8x128xf32>
    %cst_62 = arith.constant dense<0.000000e+00> : vector<128xf32>
    %119 = vector.multi_reduction <add>, %118, %cst_62 [0] : vector<8x128xf32> to vector<128xf32>
    %120 = vector.shape_cast %119 : vector<128xf32> to vector<1x128xf32>
    %cst_63 = arith.constant 3.000000e+00 : f32
    %121 = vector.broadcast %cst_63 : f32 to vector<8x128xf32>
    %122 = arith.cmpf oge, %46, %121 : vector<8x128xf32>
    %cst_64 = arith.constant 0.000000e+00 : f32
    %123 = vector.broadcast %cst_64 : f32 to vector<8x128xf32>
    %124 = arith.select %122, %44, %123 : vector<8x128xi1>, vector<8x128xf32>
    %cst_65 = arith.constant dense<0.000000e+00> : vector<128xf32>
    %125 = vector.multi_reduction <add>, %124, %cst_65 [0] : vector<8x128xf32> to vector<128xf32>
    %126 = vector.shape_cast %125 : vector<128xf32> to vector<1x128xf32>
    %c0_66 = arith.constant 0 : index
    %c3 = arith.constant 3 : index
    %c0_67 = arith.constant 0 : index
    %127 = vector.load %arg6[%c0_66, %c3, %c0_67] : memref<1x20x128xf32, #tpu.memory_space<vmem>>, vector<1x1x128xf32>
    %128 = vector.shape_cast %127 : vector<1x1x128xf32> to vector<1x128xf32>
    %129 = arith.addf %128, %120 : vector<1x128xf32>
    %c0_68 = arith.constant 0 : index
    %c3_69 = arith.constant 3 : index
    %c0_70 = arith.constant 0 : index
    %130 = vector.load %arg6[%c0_68, %c3_69, %c0_70] : memref<1x20x128xf32, #tpu.memory_space<vmem>>, vector<1x1x128xf32>
    %131 = vector.shape_cast %130 : vector<1x1x128xf32> to vector<1x128xf32>
    %132 = vector.shape_cast %129 : vector<1x128xf32> to vector<1x1x128xf32>
    tpu.vector_store %arg6[%c0_68, %c3_69, %c0_70], %132 {strides = array<i32>} : memref<1x20x128xf32, #tpu.memory_space<vmem>>, vector<1x1x128xf32>,
    %c0_71 = arith.constant 0 : index
    %c13 = arith.constant 13 : index
    %c0_72 = arith.constant 0 : index
    %133 = vector.load %arg6[%c0_71, %c13, %c0_72] : memref<1x20x128xf32, #tpu.memory_space<vmem>>, vector<1x1x128xf32>
    %134 = vector.shape_cast %133 : vector<1x1x128xf32> to vector<1x128xf32>
    %135 = arith.addf %134, %126 : vector<1x128xf32>
    %c0_73 = arith.constant 0 : index
    %c13_74 = arith.constant 13 : index
    %c0_75 = arith.constant 0 : index
    %136 = vector.load %arg6[%c0_73, %c13_74, %c0_75] : memref<1x20x128xf32, #tpu.memory_space<vmem>>, vector<1x1x128xf32>
    %137 = vector.shape_cast %136 : vector<1x1x128xf32> to vector<1x128xf32>
    %138 = vector.shape_cast %135 : vector<1x128xf32> to vector<1x1x128xf32>
    tpu.vector_store %arg6[%c0_73, %c13_74, %c0_75], %138 {strides = array<i32>} : memref<1x20x128xf32, #tpu.memory_space<vmem>>, vector<1x1x128xf32>,
    %cst_76 = arith.constant 5.000000e-01 : f32
    %139 = vector.broadcast %cst_76 : f32 to vector<8x128xf32>
    %140 = arith.cmpf oge, %42, %139 : vector<8x128xf32>
    %141 = arith.extui %140 : vector<8x128xi1> to vector<8x128xi32>
    %142 = arith.sitofp %141 : vector<8x128xi32> to vector<8x128xf32>
    %cst_77 = arith.constant dense<0.000000e+00> : vector<128xf32>
    %143 = vector.multi_reduction <add>, %142, %cst_77 [0] : vector<8x128xf32> to vector<128xf32>
    %144 = vector.shape_cast %143 : vector<128xf32> to vector<1x128xf32>
    %cst_78 = arith.constant 4.000000e+00 : f32
    %145 = vector.broadcast %cst_78 : f32 to vector<8x128xf32>
    %146 = arith.cmpf oge, %46, %145 : vector<8x128xf32>
    %cst_79 = arith.constant 0.000000e+00 : f32
    %147 = vector.broadcast %cst_79 : f32 to vector<8x128xf32>
    %148 = arith.select %146, %44, %147 : vector<8x128xi1>, vector<8x128xf32>
    %cst_80 = arith.constant dense<0.000000e+00> : vector<128xf32>
    %149 = vector.multi_reduction <add>, %148, %cst_80 [0] : vector<8x128xf32> to vector<128xf32>
    %150 = vector.shape_cast %149 : vector<128xf32> to vector<1x128xf32>
    %c0_81 = arith.constant 0 : index
    %c4 = arith.constant 4 : index
    %c0_82 = arith.constant 0 : index
    %151 = vector.load %arg6[%c0_81, %c4, %c0_82] : memref<1x20x128xf32, #tpu.memory_space<vmem>>, vector<1x1x128xf32>
    %152 = vector.shape_cast %151 : vector<1x1x128xf32> to vector<1x128xf32>
    %153 = arith.addf %152, %144 : vector<1x128xf32>
    %c0_83 = arith.constant 0 : index
    %c4_84 = arith.constant 4 : index
    %c0_85 = arith.constant 0 : index
    %154 = vector.load %arg6[%c0_83, %c4_84, %c0_85] : memref<1x20x128xf32, #tpu.memory_space<vmem>>, vector<1x1x128xf32>
    %155 = vector.shape_cast %154 : vector<1x1x128xf32> to vector<1x128xf32>
    %156 = vector.shape_cast %153 : vector<1x128xf32> to vector<1x1x128xf32>
    tpu.vector_store %arg6[%c0_83, %c4_84, %c0_85], %156 {strides = array<i32>} : memref<1x20x128xf32, #tpu.memory_space<vmem>>, vector<1x1x128xf32>,
    %c0_86 = arith.constant 0 : index
    %c14 = arith.constant 14 : index
    %c0_87 = arith.constant 0 : index
    %157 = vector.load %arg6[%c0_86, %c14, %c0_87] : memref<1x20x128xf32, #tpu.memory_space<vmem>>, vector<1x1x128xf32>
    %158 = vector.shape_cast %157 : vector<1x1x128xf32> to vector<1x128xf32>
    %159 = arith.addf %158, %150 : vector<1x128xf32>
    %c0_88 = arith.constant 0 : index
    %c14_89 = arith.constant 14 : index
    %c0_90 = arith.constant 0 : index
    %160 = vector.load %arg6[%c0_88, %c14_89, %c0_90] : memref<1x20x128xf32, #tpu.memory_space<vmem>>, vector<1x1x128xf32>
    %161 = vector.shape_cast %160 : vector<1x1x128xf32> to vector<1x128xf32>
    %162 = vector.shape_cast %159 : vector<1x128xf32> to vector<1x1x128xf32>
    tpu.vector_store %arg6[%c0_88, %c14_89, %c0_90], %162 {strides = array<i32>} : memref<1x20x128xf32, #tpu.memory_space<vmem>>, vector<1x1x128xf32>,
    %cst_91 = arith.constant 6.000000e-01 : f32
    %163 = vector.broadcast %cst_91 : f32 to vector<8x128xf32>
    %164 = arith.cmpf oge, %42, %163 : vector<8x128xf32>
    %165 = arith.extui %164 : vector<8x128xi1> to vector<8x128xi32>
    %166 = arith.sitofp %165 : vector<8x128xi32> to vector<8x128xf32>
    %cst_92 = arith.constant dense<0.000000e+00> : vector<128xf32>
    %167 = vector.multi_reduction <add>, %166, %cst_92 [0] : vector<8x128xf32> to vector<128xf32>
    %168 = vector.shape_cast %167 : vector<128xf32> to vector<1x128xf32>
    %cst_93 = arith.constant 5.000000e+00 : f32
    %169 = vector.broadcast %cst_93 : f32 to vector<8x128xf32>
    %170 = arith.cmpf oge, %46, %169 : vector<8x128xf32>
    %cst_94 = arith.constant 0.000000e+00 : f32
    %171 = vector.broadcast %cst_94 : f32 to vector<8x128xf32>
    %172 = arith.select %170, %44, %171 : vector<8x128xi1>, vector<8x128xf32>
    %cst_95 = arith.constant dense<0.000000e+00> : vector<128xf32>
    %173 = vector.multi_reduction <add>, %172, %cst_95 [0] : vector<8x128xf32> to vector<128xf32>
    %174 = vector.shape_cast %173 : vector<128xf32> to vector<1x128xf32>
    %c0_96 = arith.constant 0 : index
    %c5 = arith.constant 5 : index
    %c0_97 = arith.constant 0 : index
    %175 = vector.load %arg6[%c0_96, %c5, %c0_97] : memref<1x20x128xf32, #tpu.memory_space<vmem>>, vector<1x1x128xf32>
    %176 = vector.shape_cast %175 : vector<1x1x128xf32> to vector<1x128xf32>
    %177 = arith.addf %176, %168 : vector<1x128xf32>
    %c0_98 = arith.constant 0 : index
    %c5_99 = arith.constant 5 : index
    %c0_100 = arith.constant 0 : index
    %178 = vector.load %arg6[%c0_98, %c5_99, %c0_100] : memref<1x20x128xf32, #tpu.memory_space<vmem>>, vector<1x1x128xf32>
    %179 = vector.shape_cast %178 : vector<1x1x128xf32> to vector<1x128xf32>
    %180 = vector.shape_cast %177 : vector<1x128xf32> to vector<1x1x128xf32>
    tpu.vector_store %arg6[%c0_98, %c5_99, %c0_100], %180 {strides = array<i32>} : memref<1x20x128xf32, #tpu.memory_space<vmem>>, vector<1x1x128xf32>,
    %c0_101 = arith.constant 0 : index
    %c15 = arith.constant 15 : index
    %c0_102 = arith.constant 0 : index
    %181 = vector.load %arg6[%c0_101, %c15, %c0_102] : memref<1x20x128xf32, #tpu.memory_space<vmem>>, vector<1x1x128xf32>
    %182 = vector.shape_cast %181 : vector<1x1x128xf32> to vector<1x128xf32>
    %183 = arith.addf %182, %174 : vector<1x128xf32>
    %c0_103 = arith.constant 0 : index
    %c15_104 = arith.constant 15 : index
    %c0_105 = arith.constant 0 : index
    %184 = vector.load %arg6[%c0_103, %c15_104, %c0_105] : memref<1x20x128xf32, #tpu.memory_space<vmem>>, vector<1x1x128xf32>
    %185 = vector.shape_cast %184 : vector<1x1x128xf32> to vector<1x128xf32>
    %186 = vector.shape_cast %183 : vector<1x128xf32> to vector<1x1x128xf32>
    tpu.vector_store %arg6[%c0_103, %c15_104, %c0_105], %186 {strides = array<i32>} : memref<1x20x128xf32, #tpu.memory_space<vmem>>, vector<1x1x128xf32>,
    %cst_106 = arith.constant 0.699999988 : f32
    %187 = vector.broadcast %cst_106 : f32 to vector<8x128xf32>
    %188 = arith.cmpf oge, %42, %187 : vector<8x128xf32>
    %189 = arith.extui %188 : vector<8x128xi1> to vector<8x128xi32>
    %190 = arith.sitofp %189 : vector<8x128xi32> to vector<8x128xf32>
    %cst_107 = arith.constant dense<0.000000e+00> : vector<128xf32>
    %191 = vector.multi_reduction <add>, %190, %cst_107 [0] : vector<8x128xf32> to vector<128xf32>
    %192 = vector.shape_cast %191 : vector<128xf32> to vector<1x128xf32>
    %cst_108 = arith.constant 6.000000e+00 : f32
    %193 = vector.broadcast %cst_108 : f32 to vector<8x128xf32>
    %194 = arith.cmpf oge, %46, %193 : vector<8x128xf32>
    %cst_109 = arith.constant 0.000000e+00 : f32
    %195 = vector.broadcast %cst_109 : f32 to vector<8x128xf32>
    %196 = arith.select %194, %44, %195 : vector<8x128xi1>, vector<8x128xf32>
    %cst_110 = arith.constant dense<0.000000e+00> : vector<128xf32>
    %197 = vector.multi_reduction <add>, %196, %cst_110 [0] : vector<8x128xf32> to vector<128xf32>
    %198 = vector.shape_cast %197 : vector<128xf32> to vector<1x128xf32>
    %c0_111 = arith.constant 0 : index
    %c6 = arith.constant 6 : index
    %c0_112 = arith.constant 0 : index
    %199 = vector.load %arg6[%c0_111, %c6, %c0_112] : memref<1x20x128xf32, #tpu.memory_space<vmem>>, vector<1x1x128xf32>
    %200 = vector.shape_cast %199 : vector<1x1x128xf32> to vector<1x128xf32>
    %201 = arith.addf %200, %192 : vector<1x128xf32>
    %c0_113 = arith.constant 0 : index
    %c6_114 = arith.constant 6 : index
    %c0_115 = arith.constant 0 : index
    %202 = vector.load %arg6[%c0_113, %c6_114, %c0_115] : memref<1x20x128xf32, #tpu.memory_space<vmem>>, vector<1x1x128xf32>
    %203 = vector.shape_cast %202 : vector<1x1x128xf32> to vector<1x128xf32>
    %204 = vector.shape_cast %201 : vector<1x128xf32> to vector<1x1x128xf32>
    tpu.vector_store %arg6[%c0_113, %c6_114, %c0_115], %204 {strides = array<i32>} : memref<1x20x128xf32, #tpu.memory_space<vmem>>, vector<1x1x128xf32>,
    %c0_116 = arith.constant 0 : index
    %c16 = arith.constant 16 : index
    %c0_117 = arith.constant 0 : index
    %205 = vector.load %arg6[%c0_116, %c16, %c0_117] : memref<1x20x128xf32, #tpu.memory_space<vmem>>, vector<1x1x128xf32>
    %206 = vector.shape_cast %205 : vector<1x1x128xf32> to vector<1x128xf32>
    %207 = arith.addf %206, %198 : vector<1x128xf32>
    %c0_118 = arith.constant 0 : index
    %c16_119 = arith.constant 16 : index
    %c0_120 = arith.constant 0 : index
    %208 = vector.load %arg6[%c0_118, %c16_119, %c0_120] : memref<1x20x128xf32, #tpu.memory_space<vmem>>, vector<1x1x128xf32>
    %209 = vector.shape_cast %208 : vector<1x1x128xf32> to vector<1x128xf32>
    %210 = vector.shape_cast %207 : vector<1x128xf32> to vector<1x1x128xf32>
    tpu.vector_store %arg6[%c0_118, %c16_119, %c0_120], %210 {strides = array<i32>} : memref<1x20x128xf32, #tpu.memory_space<vmem>>, vector<1x1x128xf32>,
    %cst_121 = arith.constant 8.000000e-01 : f32
    %211 = vector.broadcast %cst_121 : f32 to vector<8x128xf32>
    %212 = arith.cmpf oge, %42, %211 : vector<8x128xf32>
    %213 = arith.extui %212 : vector<8x128xi1> to vector<8x128xi32>
    %214 = arith.sitofp %213 : vector<8x128xi32> to vector<8x128xf32>
    %cst_122 = arith.constant dense<0.000000e+00> : vector<128xf32>
    %215 = vector.multi_reduction <add>, %214, %cst_122 [0] : vector<8x128xf32> to vector<128xf32>
    %216 = vector.shape_cast %215 : vector<128xf32> to vector<1x128xf32>
    %cst_123 = arith.constant 7.000000e+00 : f32
    %217 = vector.broadcast %cst_123 : f32 to vector<8x128xf32>
    %218 = arith.cmpf oge, %46, %217 : vector<8x128xf32>
    %cst_124 = arith.constant 0.000000e+00 : f32
    %219 = vector.broadcast %cst_124 : f32 to vector<8x128xf32>
    %220 = arith.select %218, %44, %219 : vector<8x128xi1>, vector<8x128xf32>
    %cst_125 = arith.constant dense<0.000000e+00> : vector<128xf32>
    %221 = vector.multi_reduction <add>, %220, %cst_125 [0] : vector<8x128xf32> to vector<128xf32>
    %222 = vector.shape_cast %221 : vector<128xf32> to vector<1x128xf32>
    %c0_126 = arith.constant 0 : index
    %c7 = arith.constant 7 : index
    %c0_127 = arith.constant 0 : index
    %223 = vector.load %arg6[%c0_126, %c7, %c0_127] : memref<1x20x128xf32, #tpu.memory_space<vmem>>, vector<1x1x128xf32>
    %224 = vector.shape_cast %223 : vector<1x1x128xf32> to vector<1x128xf32>
    %225 = arith.addf %224, %216 : vector<1x128xf32>
    %c0_128 = arith.constant 0 : index
    %c7_129 = arith.constant 7 : index
    %c0_130 = arith.constant 0 : index
    %226 = vector.load %arg6[%c0_128, %c7_129, %c0_130] : memref<1x20x128xf32, #tpu.memory_space<vmem>>, vector<1x1x128xf32>
    %227 = vector.shape_cast %226 : vector<1x1x128xf32> to vector<1x128xf32>
    %228 = vector.shape_cast %225 : vector<1x128xf32> to vector<1x1x128xf32>
    tpu.vector_store %arg6[%c0_128, %c7_129, %c0_130], %228 {strides = array<i32>} : memref<1x20x128xf32, #tpu.memory_space<vmem>>, vector<1x1x128xf32>,
    %c0_131 = arith.constant 0 : index
    %c17 = arith.constant 17 : index
    %c0_132 = arith.constant 0 : index
    %229 = vector.load %arg6[%c0_131, %c17, %c0_132] : memref<1x20x128xf32, #tpu.memory_space<vmem>>, vector<1x1x128xf32>
    %230 = vector.shape_cast %229 : vector<1x1x128xf32> to vector<1x128xf32>
    %231 = arith.addf %230, %222 : vector<1x128xf32>
    %c0_133 = arith.constant 0 : index
    %c17_134 = arith.constant 17 : index
    %c0_135 = arith.constant 0 : index
    %232 = vector.load %arg6[%c0_133, %c17_134, %c0_135] : memref<1x20x128xf32, #tpu.memory_space<vmem>>, vector<1x1x128xf32>
    %233 = vector.shape_cast %232 : vector<1x1x128xf32> to vector<1x128xf32>
    %234 = vector.shape_cast %231 : vector<1x128xf32> to vector<1x1x128xf32>
    tpu.vector_store %arg6[%c0_133, %c17_134, %c0_135], %234 {strides = array<i32>} : memref<1x20x128xf32, #tpu.memory_space<vmem>>, vector<1x1x128xf32>,
    %cst_136 = arith.constant 0.899999976 : f32
    %235 = vector.broadcast %cst_136 : f32 to vector<8x128xf32>
    %236 = arith.cmpf oge, %42, %235 : vector<8x128xf32>
    %237 = arith.extui %236 : vector<8x128xi1> to vector<8x128xi32>
    %238 = arith.sitofp %237 : vector<8x128xi32> to vector<8x128xf32>
    %cst_137 = arith.constant dense<0.000000e+00> : vector<128xf32>
    %239 = vector.multi_reduction <add>, %238, %cst_137 [0] : vector<8x128xf32> to vector<128xf32>
    %240 = vector.shape_cast %239 : vector<128xf32> to vector<1x128xf32>
    %cst_138 = arith.constant 8.000000e+00 : f32
    %241 = vector.broadcast %cst_138 : f32 to vector<8x128xf32>
    %242 = arith.cmpf oge, %46, %241 : vector<8x128xf32>
    %cst_139 = arith.constant 0.000000e+00 : f32
    %243 = vector.broadcast %cst_139 : f32 to vector<8x128xf32>
    %244 = arith.select %242, %44, %243 : vector<8x128xi1>, vector<8x128xf32>
    %cst_140 = arith.constant dense<0.000000e+00> : vector<128xf32>
    %245 = vector.multi_reduction <add>, %244, %cst_140 [0] : vector<8x128xf32> to vector<128xf32>
    %246 = vector.shape_cast %245 : vector<128xf32> to vector<1x128xf32>
    %c0_141 = arith.constant 0 : index
    %c8 = arith.constant 8 : index
    %c0_142 = arith.constant 0 : index
    %247 = vector.load %arg6[%c0_141, %c8, %c0_142] : memref<1x20x128xf32, #tpu.memory_space<vmem>>, vector<1x1x128xf32>
    %248 = vector.shape_cast %247 : vector<1x1x128xf32> to vector<1x128xf32>
    %249 = arith.addf %248, %240 : vector<1x128xf32>
    %c0_143 = arith.constant 0 : index
    %c8_144 = arith.constant 8 : index
    %c0_145 = arith.constant 0 : index
    %250 = vector.load %arg6[%c0_143, %c8_144, %c0_145] : memref<1x20x128xf32, #tpu.memory_space<vmem>>, vector<1x1x128xf32>
    %251 = vector.shape_cast %250 : vector<1x1x128xf32> to vector<1x128xf32>
    %252 = vector.shape_cast %249 : vector<1x128xf32> to vector<1x1x128xf32>
    tpu.vector_store %arg6[%c0_143, %c8_144, %c0_145], %252 {strides = array<i32>} : memref<1x20x128xf32, #tpu.memory_space<vmem>>, vector<1x1x128xf32>,
    %c0_146 = arith.constant 0 : index
    %c18 = arith.constant 18 : index
    %c0_147 = arith.constant 0 : index
    %253 = vector.load %arg6[%c0_146, %c18, %c0_147] : memref<1x20x128xf32, #tpu.memory_space<vmem>>, vector<1x1x128xf32>
    %254 = vector.shape_cast %253 : vector<1x1x128xf32> to vector<1x128xf32>
    %255 = arith.addf %254, %246 : vector<1x128xf32>
    %c0_148 = arith.constant 0 : index
    %c18_149 = arith.constant 18 : index
    %c0_150 = arith.constant 0 : index
    %256 = vector.load %arg6[%c0_148, %c18_149, %c0_150] : memref<1x20x128xf32, #tpu.memory_space<vmem>>, vector<1x1x128xf32>
    %257 = vector.shape_cast %256 : vector<1x1x128xf32> to vector<1x128xf32>
    %258 = vector.shape_cast %255 : vector<1x128xf32> to vector<1x1x128xf32>
    tpu.vector_store %arg6[%c0_148, %c18_149, %c0_150], %258 {strides = array<i32>} : memref<1x20x128xf32, #tpu.memory_space<vmem>>, vector<1x1x128xf32>,
    %cst_151 = arith.constant 1.000000e+00 : f32
    %259 = vector.broadcast %cst_151 : f32 to vector<8x128xf32>
    %260 = arith.cmpf oge, %42, %259 : vector<8x128xf32>
    %261 = arith.extui %260 : vector<8x128xi1> to vector<8x128xi32>
    %262 = arith.sitofp %261 : vector<8x128xi32> to vector<8x128xf32>
    %cst_152 = arith.constant dense<0.000000e+00> : vector<128xf32>
    %263 = vector.multi_reduction <add>, %262, %cst_152 [0] : vector<8x128xf32> to vector<128xf32>
    %264 = vector.shape_cast %263 : vector<128xf32> to vector<1x128xf32>
    %cst_153 = arith.constant 9.000000e+00 : f32
    %265 = vector.broadcast %cst_153 : f32 to vector<8x128xf32>
    %266 = arith.cmpf oge, %46, %265 : vector<8x128xf32>
    %cst_154 = arith.constant 0.000000e+00 : f32
    %267 = vector.broadcast %cst_154 : f32 to vector<8x128xf32>
    %268 = arith.select %266, %44, %267 : vector<8x128xi1>, vector<8x128xf32>
    %cst_155 = arith.constant dense<0.000000e+00> : vector<128xf32>
    %269 = vector.multi_reduction <add>, %268, %cst_155 [0] : vector<8x128xf32> to vector<128xf32>
    %270 = vector.shape_cast %269 : vector<128xf32> to vector<1x128xf32>
    %c0_156 = arith.constant 0 : index
    %c9 = arith.constant 9 : index
    %c0_157 = arith.constant 0 : index
    %271 = vector.load %arg6[%c0_156, %c9, %c0_157] : memref<1x20x128xf32, #tpu.memory_space<vmem>>, vector<1x1x128xf32>
    %272 = vector.shape_cast %271 : vector<1x1x128xf32> to vector<1x128xf32>
    %273 = arith.addf %272, %264 : vector<1x128xf32>
    %c0_158 = arith.constant 0 : index
    %c9_159 = arith.constant 9 : index
    %c0_160 = arith.constant 0 : index
    %274 = vector.load %arg6[%c0_158, %c9_159, %c0_160] : memref<1x20x128xf32, #tpu.memory_space<vmem>>, vector<1x1x128xf32>
    %275 = vector.shape_cast %274 : vector<1x1x128xf32> to vector<1x128xf32>
    %276 = vector.shape_cast %273 : vector<1x128xf32> to vector<1x1x128xf32>
    tpu.vector_store %arg6[%c0_158, %c9_159, %c0_160], %276 {strides = array<i32>} : memref<1x20x128xf32, #tpu.memory_space<vmem>>, vector<1x1x128xf32>,
    %c0_161 = arith.constant 0 : index
    %c19 = arith.constant 19 : index
    %c0_162 = arith.constant 0 : index
    %277 = vector.load %arg6[%c0_161, %c19, %c0_162] : memref<1x20x128xf32, #tpu.memory_space<vmem>>, vector<1x1x128xf32>
    %278 = vector.shape_cast %277 : vector<1x1x128xf32> to vector<1x128xf32>
    %279 = arith.addf %278, %270 : vector<1x128xf32>
    %c0_163 = arith.constant 0 : index
    %c19_164 = arith.constant 19 : index
    %c0_165 = arith.constant 0 : index
    %280 = vector.load %arg6[%c0_163, %c19_164, %c0_165] : memref<1x20x128xf32, #tpu.memory_space<vmem>>, vector<1x1x128xf32>
    %281 = vector.shape_cast %280 : vector<1x1x128xf32> to vector<1x128xf32>
    %282 = vector.shape_cast %279 : vector<1x128xf32> to vector<1x1x128xf32>
    tpu.vector_store %arg6[%c0_163, %c19_164, %c0_165], %282 {strides = array<i32>} : memref<1x20x128xf32, #tpu.memory_space<vmem>>, vector<1x1x128xf32>,
    return
  }
  func.func @transform_0(%arg0: i32, %arg1: i32, %arg2: memref<1xi32, #tpu.memory_space<smem>>) -> (i32, i32) {
    %c1_i32 = arith.constant 1 : i32
    %0 = arith.muli %arg0, %c1_i32 : i32
    %1 = arith.addi %0, %arg1 : i32
    %c0_i32 = arith.constant 0 : i32
    %2 = arith.minsi %1, %c0_i32 : i32
    %c0_i32_0 = arith.constant 0 : i32
    %c0_i32_1 = arith.constant 0 : i32
    return %2, %c0_i32_0 : i32, i32
  }
  func.func @transform_1(%arg0: i32, %arg1: i32, %arg2: memref<1xi32, #tpu.memory_space<smem>>) -> (i32, i32) {
    %c1_i32 = arith.constant 1 : i32
    %0 = arith.muli %arg0, %c1_i32 : i32
    %1 = arith.addi %0, %arg1 : i32
    %c0_i32 = arith.constant 0 : i32
    %2 = arith.minsi %1, %c0_i32 : i32
    %c0_i32_0 = arith.constant 0 : i32
    %c0_i32_1 = arith.constant 0 : i32
    return %2, %c0_i32_0 : i32, i32
  }
  func.func @transform_2(%arg0: i32, %arg1: i32, %arg2: memref<1xi32, #tpu.memory_space<smem>>) -> (i32, i32) {
    %c1_i32 = arith.constant 1 : i32
    %0 = arith.muli %arg0, %c1_i32 : i32
    %1 = arith.addi %0, %arg1 : i32
    %c0_i32 = arith.constant 0 : i32
    %2 = arith.minsi %1, %c0_i32 : i32
    %c0_i32_0 = arith.constant 0 : i32
    %c0_i32_1 = arith.constant 0 : i32
    return %2, %c0_i32_0 : i32, i32
  }
  func.func @transform_3(%arg0: i32, %arg1: i32, %arg2: memref<1xi32, #tpu.memory_space<smem>>) -> (i32, i32, i32) {
    %c0_i32 = arith.constant 0 : i32
    %c0_i32_0 = arith.constant 0 : i32
    %c0_i32_1 = arith.constant 0 : i32
    return %arg0, %c0_i32, %c0_i32_0 : i32, i32, i32
  }
}

</mosaic_0001>

<bundles_post_ra>
// kernel: tpu_custom_call.1
= control target key start
LH: loop header
LB: loop body
LE: loop exit
PB: predicated region body
PF: predicated region fallthrough
CT: control target
= control target key end

     0   :  { %10 = vsyncpa [#allocation5], 0  ;;  %s702_s0 = inlined_call_operand.<no memory space> [shape: s32[1], index: 0, kind: input, shape index: {}]   ;;  %s703_s1 = inlined_call_operand.hbm [shape: f32[8,128], index: 1, kind: input, shape index: {}]   ;;  %s704_s2 = inlined_call_operand.hbm [shape: f32[8,128], index: 2, kind: input, shape index: {}]   ;;  %s705_s3 = inlined_call_operand.hbm [shape: f32[8,128], index: 3, kind: input, shape index: {}]   ;;  %s706_s4 = inlined_call_operand.vmem [shape: f32[1,20,128], index: 4, kind: output, shape index: {}]  }
   0x1   :  { %11 = vsyncpa [#allocation7], 0  ;;  %s38_s17 = sshll.u32 %s704_s2, 4  ;;  %s472_s18 = smov [#allocation6]   ;;  %s39_s17 = int_to_ptr.hbm [resolvable:$true] %s38_s17 }
   0x2   :  { %s40_s19 = sshll.u32 %s472_s18, 4  ;;  %s22_s22 = sshll.u32 %s703_s1, 4  ;;  %s41_s19 = int_to_ptr.vmem [resolvable:$true] %s40_s19  ;;  %s23_s22 = int_to_ptr.hbm [resolvable:$true] %s22_s22 }
   0x3   :  { %43 = dma.hbm_to_vmem [thread:$0]  %s39_s17, 128, %s41_s19, [#allocation7]  }
   0x4   :  { %s473_s23 = smov [#allocation4]   ;;  %s54_s27 = sshll.u32 %s705_s3, 4  ;;  %s55_s27 = int_to_ptr.hbm [resolvable:$true] %s54_s27 }
   0x5   :  { %s24_s24 = sshll.u32 %s473_s23, 4  ;;  %s474_s2 = smov [#allocation8]   ;;  %s25_s24 = int_to_ptr.vmem [resolvable:$true] %s24_s24 }
   0x6   :  { %27 = dma.hbm_to_vmem [thread:$0]  %s23_s22, 128, %s25_s24, [#allocation5]  }
   0x7   :  { %s56_s28 = sshll.u32 %s474_s2, 4  ;;  %s57_s28 = int_to_ptr.vmem [resolvable:$true] %s56_s28 }
   0x8   :  { %59 = dma.hbm_to_vmem [thread:$0]  %s55_s27, 128, %s57_s28, [#allocation7]  }
   0x9   :  { %468 = dma.done.wait [#allocation5], 128  }
   0xa   :  { %469 = vsyncadd [#allocation5], 4294967168 }
   0xb   :  { %470 = dma.done.wait [#allocation7], 256  }
   0xc   :  { %471 = vsyncadd [#allocation7], 4294967040  ;;  %v475_v0 = vmov 0.0   ;;  %v122_v1 = vlaneseq  ;;  %v89_v5 = vld [vmem:[#allocation4] sm:$0xff]  ;;  %v90_v6 = vld [vmem:[#allocation6] sm:$0xff]  ;;  %v131_v14 = vstv %s702_s0 }
   0xd   :  { %86 = vst [vmem:[%s706_s4] sm:$0xff] %v475_v0  ;;  %v91_v7 = vld [vmem:[#allocation8] sm:$0xff]  ;;  %v92_v8 = vsub.f32 %v89_v5, %v90_v6 }
   0xe   :  { %87 = vst [vmem:[%s706_s4 + $0x8] sm:$0xff] %v475_v0  ;;  %v123_v2 = vshrl.u32 %v122_v1, 7  ;;  %v128_v3 = vand.u32 127, %v122_v1  ;;  %v98_v9 = vmul.f32 2.0, %v91_v7  ;;  %v93_v10 = vsub.f32 0.0, %v91_v7 }
   0xf   :  { %88 = vst [vmem:[%s706_s4 + $0x10] sm:$0xf] %v475_v0  ;;  %v97_v12 = vsub.f32 0.0, %v92_v8 }
  0x10   :  { %v129_v4 = vmul.u32 128, %v123_v2  ;;  %v376_v13 = vadd.f32 -1.0, %v98_v9  ;;  %v94_v15 = vmul.f32 %v93_v10, %v92_v8 }
  0x12   :  { %v130_v11 = vadd.s32 %v129_v4, %v128_v3  ;;  %v100_v16 = vmul.f32 %v376_v13, %v97_v12  ;;  %v96_v17 = vmax.f32 %v94_v15, 0.0 }
  0x14   :  { %vm525_vm0 = vcmp.lt.s32.totalorder %v130_v11, %v131_v14  ;;  %v377_v19 = vmul.f32 -1.442695, %v100_v16  ;;  %v151_v15 = vld [vmem:[%s706_s4] sm:$0x1]  ;;  %v174_v16 = vld [vmem:[%s706_s4 + $0x1] sm:$0x1] }
  0x15   :  { %v531_v20 = vsel %vm525_vm0, %v96_v17, 0.0  ;;  %v154_v29 = vld [vmem:[%s706_s4 + $0xa] sm:$0x1] }
  0x16   :  { %v145_v21 = vrot.slane %v531_v20, 4  ;;  %392 = vpow2.f32 %v377_v19 }
  0x18   :  { %v146_v22 = vadd.f32 %v145_v21, %v531_v20 }
  0x1a   :  { %v147_v23 = vrot.slane %v146_v22, 2 }
  0x1c   :  { %v148_v24 = vadd.f32 %v147_v23, %v146_v22  ;;  %v393_v25 = vpop.eup %392 }
  0x1d   :  { %v105_v26 = vadd.f32 1.0, %v393_v25  ;;  %v197_v25 = vld [vmem:[%s706_s4 + $0x2] sm:$0x1] }
  0x1e   :  { %v149_v27 = vrot.slane %v148_v24, 1 }
  0x1f   :  { %394 = vrcp.f32 %v105_v26  ;;  %v117_v33 = vand.u32 2147483648, %v105_v26  ;;  %vm111_vm1 = vweird.f32 %v105_v26  ;;  %v115_v35 = vand.u32 2147483647, %v105_v26 }
  0x20   :  { %v150_v28 = vadd.f32 %v149_v27, %v148_v24  ;;  %v177_v27 = vld [vmem:[%s706_s4 + $0xb] sm:$0x1] }
  0x21   :  { %v118_v37 = vor.u32 1.1754944e-38, %v117_v33  ;;  %vm116_vm4 = vcmp.eq.f32.partialorder %v115_v35, 8.507059e+37  ;;  %v200_v35 = vld [vmem:[%s706_s4 + $0xc] sm:$0x1] }
  0x22   :  { %v155_v30 = vadd.f32 %v154_v29, %v150_v28 }
  0x24   :  { %156 = vst [vmem:[%s706_s4 + $0xa] sm:$0x1] %v155_v30 }
  0x25   :  { %v395_v31 = vpop.eup %394 }
  0x26   :  { %v107_v32 = vmul.f32 %v395_v31, %v105_v26  ;;  %vm112_vm2 = vweird.f32 %v395_v31 }
  0x27   :  { %vm113_vm3 = vmor %vm111_vm1, %vm112_vm2 }
  0x28   :  { %v108_v34 = vsub.f32 1.0, %v107_v32 }
  0x2a   :  { %v109_v36 = vmul.f32 %v395_v31, %v108_v34 }
  0x2c   :  { %v110_v38 = vadd.f32 %v395_v31, %v109_v36  ;;  %v220_v36 = vld [vmem:[%s706_s4 + $0x3] sm:$0x1] }
  0x2e   :  { %v114_v39 = vsel %vm113_vm3, %v395_v31, %v110_v38 }
  0x2f   :  { %v119_v40 = vsel %vm116_vm4, %v118_v37, %v114_v39 }
  0x30   :  { %v543_v41 = vsel %vm525_vm0, %v119_v40, 1.0 }
  0x31   :  { %vm136_vm5 = vcmp.ge.f32.partialorder %v543_v41, 0.1  ;;  %vm157_vm6 = vcmp.ge.f32.partialorder %v543_v41, 0.2  ;;  %v548_v42 = vmul.f32 10.0, %v543_v41  ;;  %vm226_vm7 = vcmp.ge.f32.partialorder %v543_v41, 0.5 }
  0x32   :  { %v378_v43 = vsel %vm136_vm5, 1.0, %v475_v0  ;;  %v379_v44 = vsel %vm157_vm6, 1.0, %v475_v0  ;;  %vm180_vm8 = vcmp.ge.f32.partialorder %v543_v41, 0.3  ;;  %vm203_vm9 = vcmp.ge.f32.partialorder %v543_v41, 0.4 }
  0x33   :  { %v139_v45 = vrot.slane %v378_v43, 4  ;;  %v160_v46 = vrot.slane %v379_v44, 4  ;;  %vm166_vm10 = vcmp.ge.f32.partialorder %v548_v42, 1.0  ;;  %v380_v47 = vsel %vm180_vm8, 1.0, %v475_v0 }
  0x34   :  { %v167_v48 = vsel %vm166_vm10, %v531_v20, 0.0  ;;  %v183_v49 = vrot.slane %v380_v47, 4  ;;  %vm189_vm11 = vcmp.ge.f32.partialorder %v548_v42, 2.0  ;;  %v381_v50 = vsel %vm203_vm9, 1.0, %v475_v0 }
  0x35   :  { %v140_v51 = vadd.f32 %v378_v43, %v139_v45  ;;  %v161_v52 = vadd.f32 %v379_v44, %v160_v46  ;;  %v168_v53 = vrot.slane %v167_v48, 4  ;;  %v190_v54 = vsel %vm189_vm11, %v531_v20, 0.0  ;;  %v223_v45 = vld [vmem:[%s706_s4 + $0xd] sm:$0x1] }
  0x36   :  { %v184_v55 = vadd.f32 %v380_v47, %v183_v49  ;;  %v191_v56 = vrot.slane %v190_v54, 4  ;;  %v206_v57 = vrot.slane %v381_v50, 4  ;;  %vm212_vm12 = vcmp.ge.f32.partialorder %v548_v42, 3.0 }
  0x37   :  { %v141_v58 = vrot.slane %v140_v51, 2  ;;  %v162_v59 = vrot.slane %v161_v52, 2  ;;  %v169_v60 = vadd.f32 %v168_v53, %v167_v48  ;;  %v213_v61 = vsel %vm212_vm12, %v531_v20, 0.0 }
  0x38   :  { %v185_v62 = vrot.slane %v184_v55, 2  ;;  %v192_v63 = vadd.f32 %v191_v56, %v190_v54  ;;  %v207_v1 = vadd.f32 %v381_v50, %v206_v57  ;;  %v214_v2 = vrot.slane %v213_v61, 4  ;;  %v243_v50 = vld [vmem:[%s706_s4 + $0x4] sm:$0x1] }
  0x39   :  { %v142_v3 = vadd.f32 %v141_v58, %v140_v51  ;;  %v163_v4 = vadd.f32 %v162_v59, %v161_v52  ;;  %v170_v5 = vrot.slane %v169_v60, 2  ;;  %v382_v6 = vsel %vm226_vm7, 1.0, %v475_v0 }
  0x3a   :  { %v186_v7 = vadd.f32 %v185_v62, %v184_v55  ;;  %v193_v8 = vrot.slane %v192_v63, 2  ;;  %v208_v9 = vrot.slane %v207_v1, 2  ;;  %v215_v10 = vadd.f32 %v214_v2, %v213_v61 }
  0x3b   :  { %v143_v11 = vrot.slane %v142_v3, 1  ;;  %v164_v12 = vrot.slane %v163_v4, 1  ;;  %v171_v13 = vadd.f32 %v170_v5, %v169_v60  ;;  %v229_v14 = vrot.slane %v382_v6, 4 }
  0x3c   :  { %v187_v17 = vrot.slane %v186_v7, 1  ;;  %v194_v18 = vadd.f32 %v193_v8, %v192_v63  ;;  %v209_v19 = vadd.f32 %v208_v9, %v207_v1  ;;  %v216_v21 = vrot.slane %v215_v10, 2 }
  0x3d   :  { %v144_v22 = vadd.f32 %v143_v11, %v142_v3  ;;  %v165_v23 = vadd.f32 %v164_v12, %v163_v4  ;;  %v172_v24 = vrot.slane %v171_v13, 1  ;;  %v230_v26 = vadd.f32 %v382_v6, %v229_v14 }
  0x3e   :  { %v188_v28 = vadd.f32 %v187_v17, %v186_v7  ;;  %v195_v29 = vrot.slane %v194_v18, 1  ;;  %v210_v30 = vrot.slane %v209_v19, 1  ;;  %v217_v31 = vadd.f32 %v216_v21, %v215_v10  ;;  %v246_v21 = vld [vmem:[%s706_s4 + $0xe] sm:$0x1] }
  0x3f   :  { %v152_v32 = vadd.f32 %v151_v15, %v144_v22  ;;  %v175_v33 = vadd.f32 %v174_v16, %v165_v23  ;;  %v173_v34 = vadd.f32 %v172_v24, %v171_v13  ;;  %v231_v37 = vrot.slane %v230_v26, 2 }
  0x40   :  { %v198_v38 = vadd.f32 %v197_v25, %v188_v28  ;;  %v196_v39 = vadd.f32 %v195_v29, %v194_v18  ;;  %v211_v40 = vadd.f32 %v210_v30, %v209_v19  ;;  %v218_v43 = vrot.slane %v217_v31, 1 }
  0x41   :  { %153 = vst [vmem:[%s706_s4] sm:$0x1] %v152_v32  ;;  %v178_v44 = vadd.f32 %v177_v27, %v173_v34  ;;  %v232_v46 = vadd.f32 %v231_v37, %v230_v26  ;;  %vm235_vm13 = vcmp.ge.f32.partialorder %v548_v42, 4.0  ;;  %vm249_vm14 = vcmp.ge.f32.partialorder %v543_v41, 0.6  ;;  %v266_v26 = vld [vmem:[%s706_s4 + $0x5] sm:$0x1] }
  0x42   :  { %176 = vst [vmem:[%s706_s4 + $0x1] sm:$0x1] %v175_v33  ;;  %v201_v47 = vadd.f32 %v200_v35, %v196_v39  ;;  %v221_v48 = vadd.f32 %v220_v36, %v211_v40  ;;  %v219_v49 = vadd.f32 %v218_v43, %v217_v31  ;;  %v236_v51 = vsel %vm235_vm13, %v531_v20, 0.0  ;;  %v269_v31 = vld [vmem:[%s706_s4 + $0xf] sm:$0x1] }
  0x43   :  { %179 = vst [vmem:[%s706_s4 + $0xb] sm:$0x1] %v178_v44  ;;  %v233_v52 = vrot.slane %v232_v46, 1  ;;  %v237_v53 = vrot.slane %v236_v51, 4  ;;  %v383_v54 = vsel %vm249_vm14, 1.0, %v475_v0  ;;  %vm258_vm15 = vcmp.ge.f32.partialorder %v548_v42, 5.0 }
  0x44   :  { %199 = vst [vmem:[%s706_s4 + $0x2] sm:$0x1] %v198_v38  ;;  %v224_v55 = vadd.f32 %v223_v45, %v219_v49  ;;  %v252_v56 = vrot.slane %v383_v54, 4  ;;  %v259_v57 = vsel %vm258_vm15, %v531_v20, 0.0  ;;  %vm272_vm0 = vcmp.ge.f32.partialorder %v543_v41, 0.7 }
  0x45   :  { %202 = vst [vmem:[%s706_s4 + $0xc] sm:$0x1] %v201_v47  ;;  %v234_v58 = vadd.f32 %v233_v52, %v232_v46  ;;  %v238_v59 = vadd.f32 %v237_v53, %v236_v51  ;;  %v260_v60 = vrot.slane %v259_v57, 4  ;;  %v384_v61 = vsel %vm272_vm0, 1.0, %v475_v0  ;;  %v289_v37 = vld [vmem:[%s706_s4 + $0x6] sm:$0x1] }
  0x46   :  { %222 = vst [vmem:[%s706_s4 + $0x3] sm:$0x1] %v221_v48  ;;  %v253_v62 = vadd.f32 %v383_v54, %v252_v56  ;;  %v275_v63 = vrot.slane %v384_v61, 4  ;;  %vm281_vm1 = vcmp.ge.f32.partialorder %v548_v42, 6.0  ;;  %vm295_vm2 = vcmp.ge.f32.partialorder %v543_v41, 0.8 }
  0x47   :  { %225 = vst [vmem:[%s706_s4 + $0xd] sm:$0x1] %v224_v55  ;;  %v244_v1 = vadd.f32 %v243_v50, %v234_v58  ;;  %v239_v2 = vrot.slane %v238_v59, 2  ;;  %v261_v3 = vadd.f32 %v260_v60, %v259_v57  ;;  %v282_v4 = vsel %vm281_vm1, %v531_v20, 0.0  ;;  %v292_v45 = vld [vmem:[%s706_s4 + $0x10] sm:$0x1] }
  0x48   :  { %v254_v5 = vrot.slane %v253_v62, 2  ;;  %v276_v6 = vadd.f32 %v384_v61, %v275_v63  ;;  %v283_v7 = vrot.slane %v282_v4, 4  ;;  %v385_v8 = vsel %vm295_vm2, 1.0, %v475_v0  ;;  %v312_v49 = vld [vmem:[%s706_s4 + $0x7] sm:$0x1] }
  0x49   :  { %245 = vst [vmem:[%s706_s4 + $0x4] sm:$0x1] %v244_v1  ;;  %v240_v9 = vadd.f32 %v239_v2, %v238_v59  ;;  %v262_v10 = vrot.slane %v261_v3, 2  ;;  %v298_v11 = vrot.slane %v385_v8, 4  ;;  %vm304_vm3 = vcmp.ge.f32.partialorder %v548_v42, 7.0 }
  0x4a   :  { %v255_v12 = vadd.f32 %v254_v5, %v253_v62  ;;  %v277_v13 = vrot.slane %v276_v6, 2  ;;  %v284_v14 = vadd.f32 %v283_v7, %v282_v4  ;;  %v305_v15 = vsel %vm304_vm3, %v531_v20, 0.0  ;;  %v315_v53 = vld [vmem:[%s706_s4 + $0x11] sm:$0x1]  ;;  %v335_v7 = vld [vmem:[%s706_s4 + $0x8] sm:$0x1] }
  0x4b   :  { %v241_v16 = vrot.slane %v240_v9, 1  ;;  %v263_v17 = vadd.f32 %v262_v10, %v261_v3  ;;  %v299_v18 = vadd.f32 %v385_v8, %v298_v11  ;;  %v306_v19 = vrot.slane %v305_v15, 4 }
  0x4c   :  { %v256_v22 = vrot.slane %v255_v12, 1  ;;  %v278_v23 = vadd.f32 %v277_v13, %v276_v6  ;;  %v285_v24 = vrot.slane %v284_v14, 2  ;;  %vm318_vm4 = vcmp.ge.f32.partialorder %v543_v41, 0.9 }
  0x4d   :  { %v242_v25 = vadd.f32 %v241_v16, %v240_v9  ;;  %v264_v27 = vrot.slane %v263_v17, 1  ;;  %v300_v28 = vrot.slane %v299_v18, 2  ;;  %v307_v29 = vadd.f32 %v306_v19, %v305_v15  ;;  %v338_v15 = vld [vmem:[%s706_s4 + $0x12] sm:$0x1]  ;;  %v358_v19 = vld [vmem:[%s706_s4 + $0x9] sm:$0x1] }
  0x4e   :  { %v257_v30 = vadd.f32 %v256_v22, %v255_v12  ;;  %v279_v32 = vrot.slane %v278_v23, 1  ;;  %v286_v33 = vadd.f32 %v285_v24, %v284_v14  ;;  %v386_v34 = vsel %vm318_vm4, 1.0, %v475_v0  ;;  %v361_v24 = vld [vmem:[%s706_s4 + $0x13] sm:$0x1] }
  0x4f   :  { %v247_v35 = vadd.f32 %v246_v21, %v242_v25  ;;  %v265_v36 = vadd.f32 %v264_v27, %v263_v17  ;;  %v301_v38 = vadd.f32 %v300_v28, %v299_v18  ;;  %v308_v39 = vrot.slane %v307_v29, 2 }
  0x50   :  { %v267_v40 = vadd.f32 %v266_v26, %v257_v30  ;;  %v280_v43 = vadd.f32 %v279_v32, %v278_v23  ;;  %v287_v44 = vrot.slane %v286_v33, 1  ;;  %v321_v46 = vrot.slane %v386_v34, 4 }
  0x51   :  { %248 = vst [vmem:[%s706_s4 + $0xe] sm:$0x1] %v247_v35  ;;  %v270_v47 = vadd.f32 %v269_v31, %v265_v36  ;;  %v302_v48 = vrot.slane %v301_v38, 1  ;;  %v309_v50 = vadd.f32 %v308_v39, %v307_v29  ;;  %vm327_vm5 = vcmp.ge.f32.partialorder %v548_v42, 8.0 }
  0x52   :  { %268 = vst [vmem:[%s706_s4 + $0x5] sm:$0x1] %v267_v40  ;;  %v290_v51 = vadd.f32 %v289_v37, %v280_v43  ;;  %v288_v52 = vadd.f32 %v287_v44, %v286_v33  ;;  %v322_v54 = vadd.f32 %v386_v34, %v321_v46  ;;  %v328_v55 = vsel %vm327_vm5, %v531_v20, 0.0 }
  0x53   :  { %271 = vst [vmem:[%s706_s4 + $0xf] sm:$0x1] %v270_v47  ;;  %v303_v56 = vadd.f32 %v302_v48, %v301_v38  ;;  %v310_v57 = vrot.slane %v309_v50, 1  ;;  %v329_v58 = vrot.slane %v328_v55, 4  ;;  %vm341_vm6 = vcmp.ge.f32.partialorder %v543_v41, 1.0 }
  0x54   :  { %291 = vst [vmem:[%s706_s4 + $0x6] sm:$0x1] %v290_v51  ;;  %v293_v59 = vadd.f32 %v292_v45, %v288_v52  ;;  %v323_v60 = vrot.slane %v322_v54, 2  ;;  %v387_v61 = vsel %vm341_vm6, 1.0, %v475_v0  ;;  %vm350_vm7 = vcmp.ge.f32.partialorder %v548_v42, 9.0 }
  0x55   :  { %v313_v62 = vadd.f32 %v312_v49, %v303_v56  ;;  %v311_v63 = vadd.f32 %v310_v57, %v309_v50  ;;  %v330_v1 = vadd.f32 %v329_v58, %v328_v55  ;;  %v344_v2 = vrot.slane %v387_v61, 4 }
  0x56   :  { %294 = vst [vmem:[%s706_s4 + $0x10] sm:$0x1] %v293_v59  ;;  %v324_v3 = vadd.f32 %v323_v60, %v322_v54  ;;  %v351_v41 = vsel %vm350_vm7, %v531_v20, 0.0 }
  0x57   :  { %314 = vst [vmem:[%s706_s4 + $0x7] sm:$0x1] %v313_v62  ;;  %v316_v4 = vadd.f32 %v315_v53, %v311_v63  ;;  %v331_v5 = vrot.slane %v330_v1, 2  ;;  %v345_v0 = vadd.f32 %v387_v61, %v344_v2  ;;  %v352_v6 = vrot.slane %v351_v41, 4 }
  0x58   :  { %v325_v42 = vrot.slane %v324_v3, 1 }
  0x59   :  { %317 = vst [vmem:[%s706_s4 + $0x11] sm:$0x1] %v316_v4  ;;  %v332_v8 = vadd.f32 %v331_v5, %v330_v1  ;;  %v346_v9 = vrot.slane %v345_v0, 2  ;;  %v353_v20 = vadd.f32 %v352_v6, %v351_v41 }
  0x5a   :  { %v326_v10 = vadd.f32 %v325_v42, %v324_v3 }
  0x5b   :  { %v333_v11 = vrot.slane %v332_v8, 1  ;;  %v347_v12 = vadd.f32 %v346_v9, %v345_v0  ;;  %v354_v13 = vrot.slane %v353_v20, 2 }
  0x5c   :  { %v336_v14 = vadd.f32 %v335_v7, %v326_v10 }
  0x5d   :  { %v334_v16 = vadd.f32 %v333_v11, %v332_v8  ;;  %v348_v17 = vrot.slane %v347_v12, 1  ;;  %v355_v18 = vadd.f32 %v354_v13, %v353_v20 }
  0x5e   :  { %337 = vst [vmem:[%s706_s4 + $0x8] sm:$0x1] %v336_v14 }
  0x5f   :  { %v339_v21 = vadd.f32 %v338_v15, %v334_v16  ;;  %v349_v22 = vadd.f32 %v348_v17, %v347_v12  ;;  %v356_v23 = vrot.slane %v355_v18, 1 }
  0x61   :  { %340 = vst [vmem:[%s706_s4 + $0x12] sm:$0x1] %v339_v21  ;;  %v359_v25 = vadd.f32 %v358_v19, %v349_v22  ;;  %v357_v26 = vadd.f32 %v356_v23, %v355_v18 }
  0x63   :  { %360 = vst [vmem:[%s706_s4 + $0x9] sm:$0x1] %v359_v25  ;;  %v362_v27 = vadd.f32 %v361_v24, %v357_v26 }
  0x65   :  { %363 = vst [vmem:[%s706_s4 + $0x13] sm:$0x1] %v362_v27 }
  0x66   :  { %368 = vsyncpa [#allocation5], 1 }
  0x67   :  { %369 = vsyncpa [#allocation7], 1 }

</bundles_post_ra>
